<compile_context>
chip_gen: v7x
topology: tpu7x:2x2x1
jax: 0.10.0
libtpu: 0.0.40
codegen_flags: <defaults>
</compile_context>

<pallas_src>
import functools

import jax
import jax.numpy as jnp
from jax import lax
from jax.experimental import pallas as pl
from jax.experimental.pallas import tpu as pltpu

_EPS = 1e-8
_LANE = 128


def _pick_k_tile(hw, rows):
    """Width of the flattened-spatial reduction tile (python int)."""
    budget = 6 * 1024 * 1024                       # bytes for double-buffered image tiles
    tk = budget // (2 * 2 * max(rows, 1) * 4)      # 2 tensors x 2 buffers x rows x 4 B
    tk = max(_LANE, (tk // _LANE) * _LANE)
    tk = min(tk, 32768)
    if hw <= tk:
        return hw                                  # single K step; block == full last dim
    return tk


def _moment_loss_kernel(out_ref, tgt_ref, loss_ref, acc_ref, *,
                        B, C, H, W, hw, tk,
                        centroid_w, central_w, third_w):
    k = pl.program_id(0)
    nk = pl.num_programs(0)
    BC = B * C

    @pl.when(k == 0)
    def _init():
        acc_ref[...] = jnp.zeros_like(acc_ref)

    a = out_ref[...]                               # (BC, tk)
    b = tgt_ref[...]                               # (BC, tk)

    # ---- per-tile monomial basis, generated in-kernel (rows 0..9, 10..15 = 0)
    # flat pixel index for this K tile (exact in f32 while hw < 2**23)
    li = lax.broadcasted_iota(jnp.int32, (1, tk), 1) + k * tk
    l = li.astype(jnp.float32)
    y = jnp.floor((l + 0.5) / W)                   # image row
    x = l - y * W                                  # image column
    x = x - (W - 1) / 2.0                          # center for conditioning
    y = y - (H - 1) / 2.0
    x2 = x * x
    y2 = y * y
    basis = jnp.concatenate(
        [jnp.ones_like(x), x, y, x2, x * y, y2,
         x2 * x, x2 * y, x * y2, y2 * y,
         jnp.zeros((6, tk), jnp.float32)], axis=0)  # (16, tk)

    if hw % tk != 0:
        # Last K tile runs past hw: zero the image tail explicitly so OOB
        # garbage (potentially NaN) can never reach the accumulator.
        valid = li < hw
        a = jnp.where(valid, a, 0.0)
        b = jnp.where(valid, b, 0.0)

    # ---- one stacked MXU matmul per K step; raw moments accumulate in VMEM
    lhs = jnp.concatenate([a, b], axis=0)          # (2*BC, tk)
    acc_ref[...] += jnp.einsum(
        'mk,nk->mn', lhs, basis,
        preferred_element_type=jnp.float32,
        precision=jax.lax.Precision.HIGHEST)       # (2*BC, 16)

    # ---- one-shot finalize: channel sum, central moments, weighted MSE loss
    @pl.when(k == nk - 1)
    def _finalize():
        acc = acc_ref[...]                         # (2*BC, 16)
        hp = jax.lax.Precision.HIGHEST

        # channel reduction via tiny selection matmuls (rows are ordered b*C+c
        # for the output half, BC + b*C + c for the target half)
        bidx = lax.broadcasted_iota(jnp.int32, (B, 2 * BC), 0)
        ridx = lax.broadcasted_iota(jnp.int32, (B, 2 * BC), 1)
        sel_o = jnp.logical_and(ridx >= bidx * C,
                                ridx < (bidx + 1) * C).astype(jnp.float32)
        sel_t = jnp.logical_and(ridx >= BC + bidx * C,
                                ridx < BC + (bidx + 1) * C).astype(jnp.float32)
        mo = jnp.dot(sel_o, acc, preferred_element_type=jnp.float32, precision=hp)
        mt = jnp.dot(sel_t, acc, preferred_element_type=jnp.float32, precision=hp)

        def derive(m):                             # m: (B, 16) raw moments
            m00 = m[:, 0:1]
            m10 = m[:, 1:2]
            m01 = m[:, 2:3]
            m20 = m[:, 3:4]
            m11 = m[:, 4:5]
            m02 = m[:, 5:6]
            m30 = m[:, 6:7]
            m21 = m[:, 7:8]
            m12 = m[:, 8:9]
            m03 = m[:, 9:10]
            inv = 1.0 / (m00 + _EPS)
            cx = m10 * inv                         # centroid rel. image center
            cy = m01 * inv
            # OpenCV-style central moments (valid for raw moments about any
            # fixed origin); translation invariant, so the centered coords
            # and the reference's absolute coords give the same values.
            mu20 = m20 - cx * m10
            mu11 = m11 - cx * m01
            mu02 = m02 - cy * m01
            mu30 = m30 - 3.0 * cx * m20 + 2.0 * cx * cx * m10
            mu21 = m21 - 2.0 * cx * m11 - cy * m20 + 2.0 * cx * cx * m01
            mu12 = m12 - 2.0 * cy * m11 - cx * m02 + 2.0 * cy * cy * m10
            mu03 = m03 - 3.0 * cy * m02 + 2.0 * cy * cy * m01
            # NOTE: adding the (W-1)/2, (H-1)/2 centroid offsets back cancels
            # in the output - target differences, so it is omitted here.
            return (cx, cy, mu20, mu11, mu02, mu30, mu21, mu12, mu03)

        qo = derive(mo)
        qt = derive(mt)

        def ssq(i):                                # sum of squared diffs -> (1,1)
            d = qo[i] - qt[i]
            return jnp.sum(d * d, keepdims=True)

        inv_b = 1.0 / B
        centroid_loss = (ssq(0) + ssq(1)) * (inv_b / 2.0)
        central_loss = (ssq(2) + ssq(3) + ssq(4)) * (inv_b / 3.0)
        third_loss = (ssq(5) + ssq(6) + ssq(7) + ssq(8)) * (inv_b / 4.0)
        total = (centroid_w * centroid_loss
                 + central_w * central_loss
                 + third_w * third_loss)           # (1, 1)
        loss_ref[...] = jnp.zeros(loss_ref.shape, loss_ref.dtype) + total


def moment_based_loss(output, target, *,
                      central_moments_weight=1.0,
                      centroid_weight=1.0,
                      third_order_weight=1.0):
    assert output.shape == target.shape and output.ndim == 4
    B, C, H, W = output.shape
    hw = H * W
    rows = B * C
    # flat pixel indices are generated in f32 inside the kernel
    assert hw < (1 << 23), "spatial size too large for in-kernel f32 coords"

    # TODO(synk): compute_moments is not defined in the reference snippet; an
    # OpenCV-style moment computation on the channel-summed intensity image is
    # used as a deterministic stand-in (per-channel raw moments sum exactly to
    # the channel-summed moments, so the channel reduction is fused in-kernel).
    out_flat = output.reshape(rows, hw).astype(jnp.float32)
    tgt_flat = target.reshape(rows, hw).astype(jnp.float32)

    tk = _pick_k_tile(hw, rows)
    nk = pl.cdiv(hw, tk)

    kernel = functools.partial(
        _moment_loss_kernel,
        B=B, C=C, H=H, W=W, hw=hw, tk=tk,
        centroid_w=float(centroid_weight),
        central_w=float(central_moments_weight),
        third_w=float(third_order_weight))

    loss_row = pl.pallas_call(
        kernel,
        out_shape=jax.ShapeDtypeStruct((1, _LANE), jnp.float32),
        grid=(nk,),
        in_specs=[pl.BlockSpec((rows, tk), lambda k: (0, k)),
                  pl.BlockSpec((rows, tk), lambda k: (0, k))],
        out_specs=pl.BlockSpec((1, _LANE), lambda k: (0, 0)),
        scratch_shapes=[pltpu.VMEM((2 * rows, 16), jnp.float32)],
        compiler_params=pltpu.CompilerParams(
            dimension_semantics=("arbitrary",),
            vmem_limit_bytes=32 * 1024 * 1024),
    )(out_flat, tgt_flat)
    return loss_row[0, 0]


# ----------------------------------------------------------------------------
# Pure-JAX reference (same stand-in semantics) used only for the self-check.
# ----------------------------------------------------------------------------
def _reference_loss(output, target,
                    central_moments_weight=1.0,
                    centroid_weight=1.0,
                    third_order_weight=1.0):
    B, C, H, W = output.shape
    img_o = jnp.sum(output.astype(jnp.float32), axis=1)
    img_t = jnp.sum(target.astype(jnp.float32), axis=1)
    ys, xs = jnp.meshgrid(jnp.arange(H, dtype=jnp.float32),
                          jnp.arange(W, dtype=jnp.float32), indexing="ij")

    def derive(img):
        def raw(p, q):
            return jnp.sum(img * (xs ** p) * (ys ** q), axis=(1, 2))[:, None]
        m00, m10, m01 = raw(0, 0), raw(1, 0), raw(0, 1)
        m20, m11, m02 = raw(2, 0), raw(1, 1), raw(0, 2)
        m30, m21, m12, m03 = raw(3, 0), raw(2, 1), raw(1, 2), raw(0, 3)
        inv = 1.0 / (m00 + _EPS)
        cx, cy = m10 * inv, m01 * inv
        mu20 = m20 - cx * m10
        mu11 = m11 - cx * m01
        mu02 = m02 - cy * m01
        mu30 = m30 - 3 * cx * m20 + 2 * cx * cx * m10
        mu21 = m21 - 2 * cx * m11 - cy * m20 + 2 * cx * cx * m01
        mu12 = m12 - 2 * cy * m11 - cx * m02 + 2 * cy * cy * m10
        mu03 = m03 - 3 * cy * m02 + 2 * cy * cy * m01
        return (cx, cy, mu20, mu11, mu02, mu30, mu21, mu12, mu03)

    qo, qt = derive(img_o), derive(img_t)

    def mse(idx):
        return sum(jnp.mean((qo[i] - qt[i]) ** 2) for i in idx) / len(idx)

    return (centroid_weight * mse([0, 1])
            + central_moments_weight * mse([2, 3, 4])
            + third_order_weight * mse([5, 6, 7, 8]))


if __name__ == "__main__":
    key = jax.random.PRNGKey(0)
    k_out, k_tgt = jax.random.split(key)
    B, C, H, W = 2, 4, 16, 16
    output = jax.random.uniform(k_out, (B, C, H, W), dtype=jnp.float32)
    target = jax.random.uniform(k_tgt, (B, C, H, W), dtype=jnp.float32)

    loss = jax.jit(moment_based_loss)(output, target)
    jax.block_until_ready(loss)
    assert jnp.isfinite(loss)

    ref = _reference_loss(output, target)
    assert jnp.allclose(loss, ref, rtol=5e-3, atol=5e-3), (
        f"mismatch: pallas={float(loss)} ref={float(ref)}")
    print("KERNEL_OK")
</pallas_src>

<mosaic_0001>
module attributes {stable_mosaic.version = 11 : i64} {
  func.func @_moment_loss_kernel(%arg0: i32, %arg1: memref<8x256xf32, #tpu.memory_space<vmem>>, %arg2: memref<8x256xf32, #tpu.memory_space<vmem>>, %arg3: memref<1x128xf32, #tpu.memory_space<vmem>>, %arg4: memref<16x16xf32, #tpu.memory_space<vmem>>) attributes {dimension_semantics = [#tpu.dimension_semantics<arbitrary>], iteration_bounds = array<i64: 1>, scalar_prefetch = 0 : i64, scratch_operands = 1 : i64, tpu.core_type = #tpu.core_type<tc>, window_params = [{transform_indices = @transform_0, window_bounds = array<i64: 8, 256>}, {transform_indices = @transform_1, window_bounds = array<i64: 8, 256>}, {pipeline_mode = #tpu.pipeline_mode<synchronous>, transform_indices = @transform_2, window_bounds = array<i64: 1, 128>}]} {
    %c0_i32 = arith.constant 0 : i32
    %0 = arith.cmpi eq, %arg0, %c0_i32 : i32
    %1 = arith.extui %0 : i1 to i32
    %c0_i32_0 = arith.constant 0 : i32
    %2 = arith.cmpi ne, %1, %c0_i32_0 : i32
    scf.if %2 {
      %cst_17 = arith.constant 0.000000e+00 : f32
      %40 = vector.broadcast %cst_17 : f32 to vector<16x16xf32>
      %c0_18 = arith.constant 0 : index
      %c0_19 = arith.constant 0 : index
      %41 = vector.load %arg4[%c0_18, %c0_19] : memref<16x16xf32, #tpu.memory_space<vmem>>, vector<16x16xf32>
      tpu.vector_store %arg4[%c0_18, %c0_19], %40 {strides = array<i32>} : memref<16x16xf32, #tpu.memory_space<vmem>>, vector<16x16xf32>,
    } else {
    }
    %c0 = arith.constant 0 : index
    %c0_1 = arith.constant 0 : index
    %3 = vector.load %arg1[%c0, %c0_1] : memref<8x256xf32, #tpu.memory_space<vmem>>, vector<8x256xf32>
    %c0_2 = arith.constant 0 : index
    %c0_3 = arith.constant 0 : index
    %4 = vector.load %arg2[%c0_2, %c0_3] : memref<8x256xf32, #tpu.memory_space<vmem>>, vector<8x256xf32>
    %5 = tpu.iota {dimensions = array<i32: 1>} : vector<1x256xi32>
    %c256_i32 = arith.constant 256 : i32
    %6 = arith.muli %arg0, %c256_i32 : i32
    %7 = vector.broadcast %6 : i32 to vector<1x256xi32>
    %8 = arith.addi %5, %7 : vector<1x256xi32>
    %9 = arith.sitofp %8 : vector<1x256xi32> to vector<1x256xf32>
    %cst = arith.constant 5.000000e-01 : f32
    %10 = vector.broadcast %cst : f32 to vector<1x256xf32>
    %11 = arith.addf %9, %10 : vector<1x256xf32>
    %cst_4 = arith.constant 1.600000e+01 : f32
    %12 = vector.broadcast %cst_4 : f32 to vector<1x256xf32>
    %13 = arith.divf %11, %12 : vector<1x256xf32>
    %14 = math.floor %13 : vector<1x256xf32>
    %cst_5 = arith.constant 1.600000e+01 : f32
    %15 = vector.broadcast %cst_5 : f32 to vector<1x256xf32>
    %16 = arith.mulf %14, %15 : vector<1x256xf32>
    %17 = arith.subf %9, %16 : vector<1x256xf32>
    %cst_6 = arith.constant 7.500000e+00 : f32
    %18 = vector.broadcast %cst_6 : f32 to vector<1x256xf32>
    %19 = arith.subf %17, %18 : vector<1x256xf32>
    %cst_7 = arith.constant 7.500000e+00 : f32
    %20 = vector.broadcast %cst_7 : f32 to vector<1x256xf32>
    %21 = arith.subf %14, %20 : vector<1x256xf32>
    %22 = arith.mulf %19, %19 : vector<1x256xf32>
    %23 = arith.mulf %21, %21 : vector<1x256xf32>
    %cst_8 = arith.constant 1.000000e+00 : f32
    %24 = vector.broadcast %cst_8 : f32 to vector<1x256xf32>
    %25 = arith.mulf %19, %21 : vector<1x256xf32>
    %26 = arith.mulf %22, %19 : vector<1x256xf32>
    %27 = arith.mulf %22, %21 : vector<1x256xf32>
    %28 = arith.mulf %19, %23 : vector<1x256xf32>
    %29 = arith.mulf %23, %21 : vector<1x256xf32>
    %cst_9 = arith.constant 0.000000e+00 : f32
    %30 = vector.broadcast %cst_9 : f32 to vector<6x256xf32>
    %31 = tpu.concatenate %24, %19, %21, %22, %25, %23, %26, %27, %28, %29, %30 in 0 : vector<1x256xf32>, vector<1x256xf32>, vector<1x256xf32>, vector<1x256xf32>, vector<1x256xf32>, vector<1x256xf32>, vector<1x256xf32>, vector<1x256xf32>, vector<1x256xf32>, vector<1x256xf32>, vector<6x256xf32> -> vector<16x256xf32>
    %32 = tpu.concatenate %3, %4 in 0 : vector<8x256xf32>, vector<8x256xf32> -> vector<16x256xf32>
    %c0_10 = arith.constant 0 : index
    %c0_11 = arith.constant 0 : index
    %33 = vector.load %arg4[%c0_10, %c0_11] : memref<16x16xf32, #tpu.memory_space<vmem>>, vector<16x16xf32>
    "tpu.trace_start"() <{level = 10 : i32, message = "mk,nk->mn"}> : () -> ()
    %cst_12 = arith.constant dense<0.000000e+00> : vector<16x16xf32>
    %34 = tpu.matmul %32, %31, %cst_12 {dimension_numbers = #tpu.dot_dimension_numbers<[1], [1], [0], [0], [0, 0, 1, 0], [], []>, precision = #tpu.contract_precision<fp32>} : vector<16x256xf32>, vector<16x256xf32>, vector<16x16xf32> -> vector<16x16xf32>
    "tpu.trace_stop"() : () -> ()
    %35 = arith.addf %33, %34 : vector<16x16xf32>
    %c0_13 = arith.constant 0 : index
    %c0_14 = arith.constant 0 : index
    %36 = vector.load %arg4[%c0_13, %c0_14] : memref<16x16xf32, #tpu.memory_space<vmem>>, vector<16x16xf32>
    tpu.vector_store %arg4[%c0_13, %c0_14], %35 {strides = array<i32>} : memref<16x16xf32, #tpu.memory_space<vmem>>, vector<16x16xf32>,
    %c0_i32_15 = arith.constant 0 : i32
    %37 = arith.cmpi eq, %arg0, %c0_i32_15 : i32
    %38 = arith.extui %37 : i1 to i32
    %c0_i32_16 = arith.constant 0 : i32
    %39 = arith.cmpi ne, %38, %c0_i32_16 : i32
    scf.if %39 {
      %c0_17 = arith.constant 0 : index
      %c0_18 = arith.constant 0 : index
      %40 = vector.load %arg4[%c0_17, %c0_18] : memref<16x16xf32, #tpu.memory_space<vmem>>, vector<16x16xf32>
      %41 = tpu.iota {dimensions = array<i32: 0>} : vector<2x16xi32>
      %42 = tpu.iota {dimensions = array<i32: 1>} : vector<2x16xi32>
      %c4_i32 = arith.constant 4 : i32
      %43 = vector.broadcast %c4_i32 : i32 to vector<2x16xi32>
      %44 = arith.muli %41, %43 : vector<2x16xi32>
      %45 = arith.cmpi sge, %42, %44 : vector<2x16xi32>
      %c1_i32 = arith.constant 1 : i32
      %46 = vector.broadcast %c1_i32 : i32 to vector<2x16xi32>
      %47 = arith.addi %41, %46 : vector<2x16xi32>
      %c4_i32_19 = arith.constant 4 : i32
      %48 = vector.broadcast %c4_i32_19 : i32 to vector<2x16xi32>
      %49 = arith.muli %47, %48 : vector<2x16xi32>
      %50 = arith.cmpi slt, %42, %49 : vector<2x16xi32>
      %51 = arith.andi %45, %50 : vector<2x16xi1>
      %52 = arith.extui %51 : vector<2x16xi1> to vector<2x16xi32>
      %53 = arith.sitofp %52 : vector<2x16xi32> to vector<2x16xf32>
      %c4_i32_20 = arith.constant 4 : i32
      %54 = vector.broadcast %c4_i32_20 : i32 to vector<2x16xi32>
      %55 = arith.muli %41, %54 : vector<2x16xi32>
      %c8_i32 = arith.constant 8 : i32
      %56 = vector.broadcast %c8_i32 : i32 to vector<2x16xi32>
      %57 = arith.addi %56, %55 : vector<2x16xi32>
      %58 = arith.cmpi sge, %42, %57 : vector<2x16xi32>
      %c1_i32_21 = arith.constant 1 : i32
      %59 = vector.broadcast %c1_i32_21 : i32 to vector<2x16xi32>
      %60 = arith.addi %41, %59 : vector<2x16xi32>
      %c4_i32_22 = arith.constant 4 : i32
      %61 = vector.broadcast %c4_i32_22 : i32 to vector<2x16xi32>
      %62 = arith.muli %60, %61 : vector<2x16xi32>
      %c8_i32_23 = arith.constant 8 : i32
      %63 = vector.broadcast %c8_i32_23 : i32 to vector<2x16xi32>
      %64 = arith.addi %63, %62 : vector<2x16xi32>
      %65 = arith.cmpi slt, %42, %64 : vector<2x16xi32>
      %66 = arith.andi %58, %65 : vector<2x16xi1>
      %67 = arith.extui %66 : vector<2x16xi1> to vector<2x16xi32>
      %68 = arith.sitofp %67 : vector<2x16xi32> to vector<2x16xf32>
      %cst_24 = arith.constant dense<0.000000e+00> : vector<2x16xf32>
      %69 = tpu.matmul %53, %40, %cst_24 {dimension_numbers = #tpu.dot_dimension_numbers<[1], [0], [0], [1], [0, 0, 1, 1], [], []>, precision = #tpu.contract_precision<fp32>} : vector<2x16xf32>, vector<16x16xf32>, vector<2x16xf32> -> vector<2x16xf32>
      %cst_25 = arith.constant dense<0.000000e+00> : vector<2x16xf32>
      %70 = tpu.matmul %68, %40, %cst_25 {dimension_numbers = #tpu.dot_dimension_numbers<[1], [0], [0], [1], [0, 0, 1, 1], [], []>, precision = #tpu.contract_precision<fp32>} : vector<2x16xf32>, vector<16x16xf32>, vector<2x16xf32> -> vector<2x16xf32>
      %71 = vector.extract_strided_slice %69 {offsets = [0, 0], sizes = [2, 1], strides = [1, 1]} : vector<2x16xf32> to vector<2x1xf32>
      %72 = vector.extract_strided_slice %69 {offsets = [0, 1], sizes = [2, 1], strides = [1, 1]} : vector<2x16xf32> to vector<2x1xf32>
      %73 = vector.extract_strided_slice %69 {offsets = [0, 2], sizes = [2, 1], strides = [1, 1]} : vector<2x16xf32> to vector<2x1xf32>
      %74 = vector.extract_strided_slice %69 {offsets = [0, 3], sizes = [2, 1], strides = [1, 1]} : vector<2x16xf32> to vector<2x1xf32>
      %75 = vector.extract_strided_slice %69 {offsets = [0, 4], sizes = [2, 1], strides = [1, 1]} : vector<2x16xf32> to vector<2x1xf32>
      %76 = vector.extract_strided_slice %69 {offsets = [0, 5], sizes = [2, 1], strides = [1, 1]} : vector<2x16xf32> to vector<2x1xf32>
      %77 = vector.extract_strided_slice %69 {offsets = [0, 6], sizes = [2, 1], strides = [1, 1]} : vector<2x16xf32> to vector<2x1xf32>
      %78 = vector.extract_strided_slice %69 {offsets = [0, 7], sizes = [2, 1], strides = [1, 1]} : vector<2x16xf32> to vector<2x1xf32>
      %79 = vector.extract_strided_slice %69 {offsets = [0, 8], sizes = [2, 1], strides = [1, 1]} : vector<2x16xf32> to vector<2x1xf32>
      %80 = vector.extract_strided_slice %69 {offsets = [0, 9], sizes = [2, 1], strides = [1, 1]} : vector<2x16xf32> to vector<2x1xf32>
      %cst_26 = arith.constant 9.99999993E-9 : f32
      %81 = vector.broadcast %cst_26 : f32 to vector<2x1xf32>
      %82 = arith.addf %71, %81 : vector<2x1xf32>
      %cst_27 = arith.constant 1.000000e+00 : f32
      %83 = vector.broadcast %cst_27 : f32 to vector<2x1xf32>
      %84 = arith.divf %83, %82 : vector<2x1xf32>
      %85 = arith.mulf %72, %84 : vector<2x1xf32>
      %86 = arith.mulf %73, %84 : vector<2x1xf32>
      %87 = arith.mulf %85, %72 : vector<2x1xf32>
      %88 = arith.subf %74, %87 : vector<2x1xf32>
      %89 = arith.mulf %85, %73 : vector<2x1xf32>
      %90 = arith.subf %75, %89 : vector<2x1xf32>
      %91 = arith.mulf %86, %73 : vector<2x1xf32>
      %92 = arith.subf %76, %91 : vector<2x1xf32>
      %cst_28 = arith.constant 3.000000e+00 : f32
      %93 = vector.broadcast %cst_28 : f32 to vector<2x1xf32>
      %94 = arith.mulf %93, %85 : vector<2x1xf32>
      %95 = arith.mulf %94, %74 : vector<2x1xf32>
      %96 = arith.subf %77, %95 : vector<2x1xf32>
      %cst_29 = arith.constant 2.000000e+00 : f32
      %97 = vector.broadcast %cst_29 : f32 to vector<2x1xf32>
      %98 = arith.mulf %97, %85 : vector<2x1xf32>
      %99 = arith.mulf %98, %85 : vector<2x1xf32>
      %100 = arith.mulf %99, %72 : vector<2x1xf32>
      %101 = arith.addf %96, %100 : vector<2x1xf32>
      %cst_30 = arith.constant 2.000000e+00 : f32
      %102 = vector.broadcast %cst_30 : f32 to vector<2x1xf32>
      %103 = arith.mulf %102, %85 : vector<2x1xf32>
      %104 = arith.mulf %103, %75 : vector<2x1xf32>
      %105 = arith.subf %78, %104 : vector<2x1xf32>
      %106 = arith.mulf %86, %74 : vector<2x1xf32>
      %107 = arith.subf %105, %106 : vector<2x1xf32>
      %cst_31 = arith.constant 2.000000e+00 : f32
      %108 = vector.broadcast %cst_31 : f32 to vector<2x1xf32>
      %109 = arith.mulf %108, %85 : vector<2x1xf32>
      %110 = arith.mulf %109, %85 : vector<2x1xf32>
      %111 = arith.mulf %110, %73 : vector<2x1xf32>
      %112 = arith.addf %107, %111 : vector<2x1xf32>
      %cst_32 = arith.constant 2.000000e+00 : f32
      %113 = vector.broadcast %cst_32 : f32 to vector<2x1xf32>
      %114 = arith.mulf %113, %86 : vector<2x1xf32>
      %115 = arith.mulf %114, %75 : vector<2x1xf32>
      %116 = arith.subf %79, %115 : vector<2x1xf32>
      %117 = arith.mulf %85, %76 : vector<2x1xf32>
      %118 = arith.subf %116, %117 : vector<2x1xf32>
      %cst_33 = arith.constant 2.000000e+00 : f32
      %119 = vector.broadcast %cst_33 : f32 to vector<2x1xf32>
      %120 = arith.mulf %119, %86 : vector<2x1xf32>
      %121 = arith.mulf %120, %86 : vector<2x1xf32>
      %122 = arith.mulf %121, %72 : vector<2x1xf32>
      %123 = arith.addf %118, %122 : vector<2x1xf32>
      %cst_34 = arith.constant 3.000000e+00 : f32
      %124 = vector.broadcast %cst_34 : f32 to vector<2x1xf32>
      %125 = arith.mulf %124, %86 : vector<2x1xf32>
      %126 = arith.mulf %125, %76 : vector<2x1xf32>
      %127 = arith.subf %80, %126 : vector<2x1xf32>
      %cst_35 = arith.constant 2.000000e+00 : f32
      %128 = vector.broadcast %cst_35 : f32 to vector<2x1xf32>
      %129 = arith.mulf %128, %86 : vector<2x1xf32>
      %130 = arith.mulf %129, %86 : vector<2x1xf32>
      %131 = arith.mulf %130, %73 : vector<2x1xf32>
      %132 = arith.addf %127, %131 : vector<2x1xf32>
      %133 = vector.extract_strided_slice %70 {offsets = [0, 0], sizes = [2, 1], strides = [1, 1]} : vector<2x16xf32> to vector<2x1xf32>
      %134 = vector.extract_strided_slice %70 {offsets = [0, 1], sizes = [2, 1], strides = [1, 1]} : vector<2x16xf32> to vector<2x1xf32>
      %135 = vector.extract_strided_slice %70 {offsets = [0, 2], sizes = [2, 1], strides = [1, 1]} : vector<2x16xf32> to vector<2x1xf32>
      %136 = vector.extract_strided_slice %70 {offsets = [0, 3], sizes = [2, 1], strides = [1, 1]} : vector<2x16xf32> to vector<2x1xf32>
      %137 = vector.extract_strided_slice %70 {offsets = [0, 4], sizes = [2, 1], strides = [1, 1]} : vector<2x16xf32> to vector<2x1xf32>
      %138 = vector.extract_strided_slice %70 {offsets = [0, 5], sizes = [2, 1], strides = [1, 1]} : vector<2x16xf32> to vector<2x1xf32>
      %139 = vector.extract_strided_slice %70 {offsets = [0, 6], sizes = [2, 1], strides = [1, 1]} : vector<2x16xf32> to vector<2x1xf32>
      %140 = vector.extract_strided_slice %70 {offsets = [0, 7], sizes = [2, 1], strides = [1, 1]} : vector<2x16xf32> to vector<2x1xf32>
      %141 = vector.extract_strided_slice %70 {offsets = [0, 8], sizes = [2, 1], strides = [1, 1]} : vector<2x16xf32> to vector<2x1xf32>
      %142 = vector.extract_strided_slice %70 {offsets = [0, 9], sizes = [2, 1], strides = [1, 1]} : vector<2x16xf32> to vector<2x1xf32>
      %cst_36 = arith.constant 9.99999993E-9 : f32
      %143 = vector.broadcast %cst_36 : f32 to vector<2x1xf32>
      %144 = arith.addf %133, %143 : vector<2x1xf32>
      %cst_37 = arith.constant 1.000000e+00 : f32
      %145 = vector.broadcast %cst_37 : f32 to vector<2x1xf32>
      %146 = arith.divf %145, %144 : vector<2x1xf32>
      %147 = arith.mulf %134, %146 : vector<2x1xf32>
      %148 = arith.mulf %135, %146 : vector<2x1xf32>
      %149 = arith.mulf %147, %134 : vector<2x1xf32>
      %150 = arith.subf %136, %149 : vector<2x1xf32>
      %151 = arith.mulf %147, %135 : vector<2x1xf32>
      %152 = arith.subf %137, %151 : vector<2x1xf32>
      %153 = arith.mulf %148, %135 : vector<2x1xf32>
      %154 = arith.subf %138, %153 : vector<2x1xf32>
      %cst_38 = arith.constant 3.000000e+00 : f32
      %155 = vector.broadcast %cst_38 : f32 to vector<2x1xf32>
      %156 = arith.mulf %155, %147 : vector<2x1xf32>
      %157 = arith.mulf %156, %136 : vector<2x1xf32>
      %158 = arith.subf %139, %157 : vector<2x1xf32>
      %cst_39 = arith.constant 2.000000e+00 : f32
      %159 = vector.broadcast %cst_39 : f32 to vector<2x1xf32>
      %160 = arith.mulf %159, %147 : vector<2x1xf32>
      %161 = arith.mulf %160, %147 : vector<2x1xf32>
      %162 = arith.mulf %161, %134 : vector<2x1xf32>
      %163 = arith.addf %158, %162 : vector<2x1xf32>
      %cst_40 = arith.constant 2.000000e+00 : f32
      %164 = vector.broadcast %cst_40 : f32 to vector<2x1xf32>
      %165 = arith.mulf %164, %147 : vector<2x1xf32>
      %166 = arith.mulf %165, %137 : vector<2x1xf32>
      %167 = arith.subf %140, %166 : vector<2x1xf32>
      %168 = arith.mulf %148, %136 : vector<2x1xf32>
      %169 = arith.subf %167, %168 : vector<2x1xf32>
      %cst_41 = arith.constant 2.000000e+00 : f32
      %170 = vector.broadcast %cst_41 : f32 to vector<2x1xf32>
      %171 = arith.mulf %170, %147 : vector<2x1xf32>
      %172 = arith.mulf %171, %147 : vector<2x1xf32>
      %173 = arith.mulf %172, %135 : vector<2x1xf32>
      %174 = arith.addf %169, %173 : vector<2x1xf32>
      %cst_42 = arith.constant 2.000000e+00 : f32
      %175 = vector.broadcast %cst_42 : f32 to vector<2x1xf32>
      %176 = arith.mulf %175, %148 : vector<2x1xf32>
      %177 = arith.mulf %176, %137 : vector<2x1xf32>
      %178 = arith.subf %141, %177 : vector<2x1xf32>
      %179 = arith.mulf %147, %138 : vector<2x1xf32>
      %180 = arith.subf %178, %179 : vector<2x1xf32>
      %cst_43 = arith.constant 2.000000e+00 : f32
      %181 = vector.broadcast %cst_43 : f32 to vector<2x1xf32>
      %182 = arith.mulf %181, %148 : vector<2x1xf32>
      %183 = arith.mulf %182, %148 : vector<2x1xf32>
      %184 = arith.mulf %183, %134 : vector<2x1xf32>
      %185 = arith.addf %180, %184 : vector<2x1xf32>
      %cst_44 = arith.constant 3.000000e+00 : f32
      %186 = vector.broadcast %cst_44 : f32 to vector<2x1xf32>
      %187 = arith.mulf %186, %148 : vector<2x1xf32>
      %188 = arith.mulf %187, %138 : vector<2x1xf32>
      %189 = arith.subf %142, %188 : vector<2x1xf32>
      %cst_45 = arith.constant 2.000000e+00 : f32
      %190 = vector.broadcast %cst_45 : f32 to vector<2x1xf32>
      %191 = arith.mulf %190, %148 : vector<2x1xf32>
      %192 = arith.mulf %191, %148 : vector<2x1xf32>
      %193 = arith.mulf %192, %135 : vector<2x1xf32>
      %194 = arith.addf %189, %193 : vector<2x1xf32>
      %195 = arith.subf %85, %147 : vector<2x1xf32>
      %196 = arith.mulf %195, %195 : vector<2x1xf32>
      %197 = vector.shape_cast %196 : vector<2x1xf32> to vector<1x2x1xf32>
      %cst_46 = arith.constant dense<0.000000e+00> : vector<1xf32>
      %198 = vector.multi_reduction <add>, %197, %cst_46 [1, 2] : vector<1x2x1xf32> to vector<1xf32>
      %199 = vector.shape_cast %198 : vector<1xf32> to vector<1x1x1xf32>
      %200 = vector.extract %199[0, 0, 0] : f32 from vector<1x1x1xf32>
      %201 = vector.broadcast %200 : f32 to vector<1x1xf32>
      %202 = arith.subf %86, %148 : vector<2x1xf32>
      %203 = arith.mulf %202, %202 : vector<2x1xf32>
      %204 = vector.shape_cast %203 : vector<2x1xf32> to vector<1x2x1xf32>
      %cst_47 = arith.constant dense<0.000000e+00> : vector<1xf32>
      %205 = vector.multi_reduction <add>, %204, %cst_47 [1, 2] : vector<1x2x1xf32> to vector<1xf32>
      %206 = vector.shape_cast %205 : vector<1xf32> to vector<1x1x1xf32>
      %207 = vector.extract %206[0, 0, 0] : f32 from vector<1x1x1xf32>
      %208 = vector.broadcast %207 : f32 to vector<1x1xf32>
      %209 = arith.addf %201, %208 : vector<1x1xf32>
      %cst_48 = arith.constant 2.500000e-01 : f32
      %210 = vector.broadcast %cst_48 : f32 to vector<1x1xf32>
      %211 = arith.mulf %209, %210 : vector<1x1xf32>
      %212 = arith.subf %88, %150 : vector<2x1xf32>
      %213 = arith.mulf %212, %212 : vector<2x1xf32>
      %214 = vector.shape_cast %213 : vector<2x1xf32> to vector<1x2x1xf32>
      %cst_49 = arith.constant dense<0.000000e+00> : vector<1xf32>
      %215 = vector.multi_reduction <add>, %214, %cst_49 [1, 2] : vector<1x2x1xf32> to vector<1xf32>
      %216 = vector.shape_cast %215 : vector<1xf32> to vector<1x1x1xf32>
      %217 = vector.extract %216[0, 0, 0] : f32 from vector<1x1x1xf32>
      %218 = vector.broadcast %217 : f32 to vector<1x1xf32>
      %219 = arith.subf %90, %152 : vector<2x1xf32>
      %220 = arith.mulf %219, %219 : vector<2x1xf32>
      %221 = vector.shape_cast %220 : vector<2x1xf32> to vector<1x2x1xf32>
      %cst_50 = arith.constant dense<0.000000e+00> : vector<1xf32>
      %222 = vector.multi_reduction <add>, %221, %cst_50 [1, 2] : vector<1x2x1xf32> to vector<1xf32>
      %223 = vector.shape_cast %222 : vector<1xf32> to vector<1x1x1xf32>
      %224 = vector.extract %223[0, 0, 0] : f32 from vector<1x1x1xf32>
      %225 = vector.broadcast %224 : f32 to vector<1x1xf32>
      %226 = arith.addf %218, %225 : vector<1x1xf32>
      %227 = arith.subf %92, %154 : vector<2x1xf32>
      %228 = arith.mulf %227, %227 : vector<2x1xf32>
      %229 = vector.shape_cast %228 : vector<2x1xf32> to vector<1x2x1xf32>
      %cst_51 = arith.constant dense<0.000000e+00> : vector<1xf32>
      %230 = vector.multi_reduction <add>, %229, %cst_51 [1, 2] : vector<1x2x1xf32> to vector<1xf32>
      %231 = vector.shape_cast %230 : vector<1xf32> to vector<1x1x1xf32>
      %232 = vector.extract %231[0, 0, 0] : f32 from vector<1x1x1xf32>
      %233 = vector.broadcast %232 : f32 to vector<1x1xf32>
      %234 = arith.addf %226, %233 : vector<1x1xf32>
      %cst_52 = arith.constant 0.166666672 : f32
      %235 = vector.broadcast %cst_52 : f32 to vector<1x1xf32>
      %236 = arith.mulf %234, %235 : vector<1x1xf32>
      %237 = arith.subf %101, %163 : vector<2x1xf32>
      %238 = arith.mulf %237, %237 : vector<2x1xf32>
      %239 = vector.shape_cast %238 : vector<2x1xf32> to vector<1x2x1xf32>
      %cst_53 = arith.constant dense<0.000000e+00> : vector<1xf32>
      %240 = vector.multi_reduction <add>, %239, %cst_53 [1, 2] : vector<1x2x1xf32> to vector<1xf32>
      %241 = vector.shape_cast %240 : vector<1xf32> to vector<1x1x1xf32>
      %242 = vector.extract %241[0, 0, 0] : f32 from vector<1x1x1xf32>
      %243 = vector.broadcast %242 : f32 to vector<1x1xf32>
      %244 = arith.subf %112, %174 : vector<2x1xf32>
      %245 = arith.mulf %244, %244 : vector<2x1xf32>
      %246 = vector.shape_cast %245 : vector<2x1xf32> to vector<1x2x1xf32>
      %cst_54 = arith.constant dense<0.000000e+00> : vector<1xf32>
      %247 = vector.multi_reduction <add>, %246, %cst_54 [1, 2] : vector<1x2x1xf32> to vector<1xf32>
      %248 = vector.shape_cast %247 : vector<1xf32> to vector<1x1x1xf32>
      %249 = vector.extract %248[0, 0, 0] : f32 from vector<1x1x1xf32>
      %250 = vector.broadcast %249 : f32 to vector<1x1xf32>
      %251 = arith.addf %243, %250 : vector<1x1xf32>
      %252 = arith.subf %123, %185 : vector<2x1xf32>
      %253 = arith.mulf %252, %252 : vector<2x1xf32>
      %254 = vector.shape_cast %253 : vector<2x1xf32> to vector<1x2x1xf32>
      %cst_55 = arith.constant dense<0.000000e+00> : vector<1xf32>
      %255 = vector.multi_reduction <add>, %254, %cst_55 [1, 2] : vector<1x2x1xf32> to vector<1xf32>
      %256 = vector.shape_cast %255 : vector<1xf32> to vector<1x1x1xf32>
      %257 = vector.extract %256[0, 0, 0] : f32 from vector<1x1x1xf32>
      %258 = vector.broadcast %257 : f32 to vector<1x1xf32>
      %259 = arith.addf %251, %258 : vector<1x1xf32>
      %260 = arith.subf %132, %194 : vector<2x1xf32>
      %261 = arith.mulf %260, %260 : vector<2x1xf32>
      %262 = vector.shape_cast %261 : vector<2x1xf32> to vector<1x2x1xf32>
      %cst_56 = arith.constant dense<0.000000e+00> : vector<1xf32>
      %263 = vector.multi_reduction <add>, %262, %cst_56 [1, 2] : vector<1x2x1xf32> to vector<1xf32>
      %264 = vector.shape_cast %263 : vector<1xf32> to vector<1x1x1xf32>
      %265 = vector.extract %264[0, 0, 0] : f32 from vector<1x1x1xf32>
      %266 = vector.broadcast %265 : f32 to vector<1x1xf32>
      %267 = arith.addf %259, %266 : vector<1x1xf32>
      %cst_57 = arith.constant 1.250000e-01 : f32
      %268 = vector.broadcast %cst_57 : f32 to vector<1x1xf32>
      %269 = arith.mulf %267, %268 : vector<1x1xf32>
      %cst_58 = arith.constant 1.000000e+00 : f32
      %270 = vector.broadcast %cst_58 : f32 to vector<1x1xf32>
      %271 = arith.mulf %270, %211 : vector<1x1xf32>
      %cst_59 = arith.constant 1.000000e+00 : f32
      %272 = vector.broadcast %cst_59 : f32 to vector<1x1xf32>
      %273 = arith.mulf %272, %236 : vector<1x1xf32>
      %274 = arith.addf %271, %273 : vector<1x1xf32>
      %cst_60 = arith.constant 1.000000e+00 : f32
      %275 = vector.broadcast %cst_60 : f32 to vector<1x1xf32>
      %276 = arith.mulf %275, %269 : vector<1x1xf32>
      %277 = arith.addf %274, %276 : vector<1x1xf32>
      %cst_61 = arith.constant 0.000000e+00 : f32
      %278 = vector.broadcast %cst_61 : f32 to vector<1x128xf32>
      %279 = vector.broadcast %277 : vector<1x1xf32> to vector<1x128xf32>
      %280 = arith.addf %278, %279 : vector<1x128xf32>
      %c0_62 = arith.constant 0 : index
      %c0_63 = arith.constant 0 : index
      %281 = vector.load %arg3[%c0_62, %c0_63] : memref<1x128xf32, #tpu.memory_space<vmem>>, vector<1x128xf32>
      tpu.vector_store %arg3[%c0_62, %c0_63], %280 {strides = array<i32>} : memref<1x128xf32, #tpu.memory_space<vmem>>, vector<1x128xf32>,
    } else {
    }
    return
  }
  func.func @transform_0(%arg0: i32) -> (i32, i32) {
    %c0_i32 = arith.constant 0 : i32
    %c0_i32_0 = arith.constant 0 : i32
    return %c0_i32, %arg0 : i32, i32
  }
  func.func @transform_1(%arg0: i32) -> (i32, i32) {
    %c0_i32 = arith.constant 0 : i32
    %c0_i32_0 = arith.constant 0 : i32
    return %c0_i32, %arg0 : i32, i32
  }
  func.func @transform_2(%arg0: i32) -> (i32, i32) {
    %c0_i32 = arith.constant 0 : i32
    %c0_i32_0 = arith.constant 0 : i32
    %c0_i32_1 = arith.constant 0 : i32
    return %c0_i32, %c0_i32_0 : i32, i32
  }
}

</mosaic_0001>

<bundles_post_ra>
// kernel: moment_based_loss.1
= control target key start
LH: loop header
LB: loop body
LE: loop exit
PB: predicated region body
PF: predicated region fallthrough
CT: control target
= control target key end

     0   :  { %v23_v0 = vlaneseq  ;;  %s2588_s0 = inlined_call_operand.vmem [shape: f32[8,256], index: 0, kind: input, shape index: {}]   ;;  %s2589_s1 = inlined_call_operand.vmem [shape: f32[8,256], index: 1, kind: input, shape index: {}]   ;;  %s2590_s2 = inlined_call_operand.hbm [shape: f32[1,128], index: 2, kind: output, shape index: {}]  }
   0x1   :  { %v20_v1 = vld [vmem:[%s2588_s0 + $0x8] sm:$0xff] }
   0x2   :  { %v2313_v2 = vand.u32 127, %v23_v0  ;;  %v2315_v3 = vand.u32 4294901760, %v20_v1 }
   0x3   :  { %7 = vsyncpa [#allocation4], 0  ;;  %v19_v16 = vld [vmem:[%s2588_s0] sm:$0xff]  ;;  %v22_v17 = vld [vmem:[%s2589_s1 + $0x8] sm:$0xff]  ;;  %vm61_vm0 = vcmask 1040384   ;;  %vm64_vm1 = vcmask 1041408  }
   0x4   :  { %v25_v4 = vadd.s32 128, %v2313_v2  ;;  %v30_v5 = vcvt.s32.f32 %v2313_v2  ;;  %v2320_v6 = vsub.f32 %v20_v1, %v2315_v3  ;;  %272 = vmatprep.mubr.f32.mxu1 %v2315_v3  ;;  %v2333_v21 = vand.u32 4294901760, %v19_v16  ;;  %v21_v26 = vld [vmem:[%s2589_s1] sm:$0xff]  ;;  %s2278_s0 = smov 125   ;;  %s2279_s1 = smov 126  }
   0x5   :  { %v2335_v22 = vand.u32 4294901760, %v22_v17  ;;  %vm67_vm2 = vcmask 1042432   ;;  %vm70_vm3 = vcmask 1043456   ;;  %vm73_vm4 = vcmask 1044480   ;;  %s2280_s17 = smov 127   ;;  %s2281_s18 = smov 2  }
   0x6   :  { %v31_v7 = vcvt.s32.f32 %v25_v4  ;;  %v32_v8 = vadd.f32 0.5, %v30_v5  ;;  %v158_v9 = vand.u32 4294901760, %v2320_v6  ;;  %vm76_vm5 = vcmask 1045504   ;;  %s2282_s19 = smov 1   ;;  %s2283_s20 = smov 124  }
   0x7   :  { %vm79_vm6 = vcmask 1046528   ;;  %v2341_v31 = vsub.f32 %v19_v16, %v2333_v21  ;;  %v2344_v32 = vsub.f32 %v22_v17, %v2335_v22  ;;  %v2346_v33 = vand.u32 4294901760, %v21_v26  ;;  %s2284_s21 = smov 3   ;;  %s2285_s22 = smov 5  }
   0x8   :  { %v33_v10 = vadd.f32 0.5, %v31_v7  ;;  %v35_v11 = vmul.f32 0.0625, %v32_v8  ;;  %v159_v12 = vsub.f32 %v2320_v6, %v158_v9  ;;  %vm16_vm7 = vcmask 130048   ;;  %s2286_s23 = smov 7   ;;  %s2287_s24 = smov 6  }
   0x9   :  { %v2367_v8 = vsub.f32 %v21_v26, %v2346_v33  ;;  %vm2277_vm8 = vmmov 0   ;;  %s2288_s25 = smov 123   ;;  %vm1823_vm15 = vcmask 1024   ;;  %s2289_s26 = smov 122  }
   0xa   :  { %v36_v13 = vmul.f32 0.0625, %v33_v10  ;;  %v37_v14 = vfloor.f32 %v35_v11  ;;  %v160_v15 = vand.u32 4294901760, %v159_v12  ;;  %s2290_s27 = smov 121   ;;  %s2291_s28 = smov 120  }
   0xb   :  { %s2292_s29 = smov 119   ;;  %s2293_s11 = smov [#allocation3]  }
   0xc   :  { %v38_v18 = vfloor.f32 %v36_v13  ;;  %v39_v19 = vmul.f32 16.0, %v37_v14  ;;  %v2000_v20 = vadd.f32 -7.5, %v37_v14  ;;  %161 = vmatprep.mubr.f32.mxu0 %v160_v15  ;;  %v164_v13 = vand.u32 4294901760, %v2341_v31  ;;  %s1990_s12 = sshll.u32 %s2293_s11, 4  ;;  %s1991_s12 = int_to_ptr.vmem [resolvable:$true] %s1990_s12 }
   0xd   :  { %v173_v15 = vand.u32 4294901760, %v2344_v32  ;;  %s2251_s13 = scalar_lea.vmem %s1991_s12, 16  ;;  %s2255_s14 = scalar_lea.vmem %s1991_s12, 32 }
   0xe   :  { %v40_v23 = vmul.f32 16.0, %v38_v18  ;;  %v41_v24 = vsub.f32 %v30_v5, %v39_v19  ;;  %v2001_v25 = vadd.f32 -7.5, %v38_v18  ;;  %v49_v27 = vmul.f32 %v2000_v20, %v2000_v20  ;;  %p2252_p0 = scmp.ne.s32.totalorder %s1991_s12, %s2251_s13  ;;  %p2256_p1 = scmp.lt.s32.totalorder %s1991_s12, %s1991_s12 }
   0xf   :  { %p2257_p2 = scmp.lt.s32.totalorder %s2255_s14, %s2251_s13 }
  0x10   :  { %v42_v28 = vsub.f32 %v31_v7, %v40_v23  ;;  %v1998_v29 = vadd.f32 -7.5, %v41_v24  ;;  %v50_v30 = vmul.f32 %v2001_v25, %v2001_v25  ;;  %v59_v41 = vmul.f32 %v2000_v20, %v49_v27 }
  0x11   :  { %v179_v24 = vand.u32 4294901760, %v2367_v8  ;;  %p2258_p3 = por %p2257_p2, %p2256_p1 }
  0x12   :  { %v1999_v34 = vadd.f32 -7.5, %v42_v28  ;;  %v60_v35 = vmul.f32 %v2001_v25, %v50_v30  ;;  %v62_v36 = vsel %vm61_vm0, 1.0, %v1998_v29  ;;  %v47_v37 = vmul.f32 %v1998_v29, %v1998_v29 }
  0x13   :  { %v65_v38 = vsel %vm64_vm1, %v62_v36, %v2000_v20  ;;  %v51_v39 = vmul.f32 %v2000_v20, %v1998_v29  ;;  %v57_v40 = vmul.f32 %v1998_v29, %v49_v27  ;;  %v174_v36 = vsub.f32 %v2344_v32, %v173_v15  ;;  %p2259_p4 = pnand %p2258_p3, %p2252_p0 }
  0x14   :  { %v48_v42 = vmul.f32 %v1999_v34, %v1999_v34  ;;  %v52_v43 = vmul.f32 %v2001_v25, %v1999_v34  ;;  %v58_v44 = vmul.f32 %v1999_v34, %v50_v30  ;;  %v63_v45 = vsel %vm61_vm0, 1.0, %v1999_v34 }
  0x15   :  { %v66_v46 = vsel %vm64_vm1, %v63_v45, %v2001_v25  ;;  %v53_v47 = vmul.f32 %v1998_v29, %v47_v37  ;;  %v55_v48 = vmul.f32 %v2000_v20, %v47_v37  ;;  %v68_v49 = vsel %vm67_vm2, %v65_v38, %v47_v37 }
  0x16   :  { %v54_v50 = vmul.f32 %v1999_v34, %v48_v42  ;;  %v56_v51 = vmul.f32 %v2001_v25, %v48_v42  ;;  %v69_v52 = vsel %vm67_vm2, %v66_v46, %v48_v42  ;;  %v83_v53 = vsel %vm61_vm0, %v58_v44, %v60_v35 }
  0x17   :  { %v72_v54 = vsel %vm70_vm3, %v69_v52, %v52_v43  ;;  %v85_v55 = vsel %vm64_vm1, %v83_v53, 0.0  ;;  %v71_v56 = vsel %vm70_vm3, %v68_v49, %v51_v39  ;;  %v82_v57 = vsel %vm61_vm0, %v57_v40, %v59_v41 }
  0x18   :  { %v75_v58 = vsel %vm73_vm4, %v72_v54, %v50_v30  ;;  %v92_v59 = vand.u32 4294901760, %v85_v55  ;;  %v74_v60 = vsel %vm73_vm4, %v71_v56, %v49_v27  ;;  %v84_v61 = vsel %vm64_vm1, %v82_v57, 0.0 }
  0x19   :  { %v78_v62 = vsel %vm76_vm5, %v75_v58, %v54_v50  ;;  %v77_v63 = vsel %vm76_vm5, %v74_v60, %v53_v47  ;;  %v94_v1 = vand.u32 4294901760, %v84_v61  ;;  %v165_v27 = vsub.f32 %v2341_v31, %v164_v13 }
  0x1a   :  { %v81_v4 = vsel %vm79_vm6, %v78_v62, %v56_v51  ;;  %v80_v5 = vsel %vm79_vm6, %v77_v63, %v55_v48  ;;  %v200_v7 = vsub.f32 %v85_v55, %v92_v59  ;;  %v180_v41 = vsub.f32 %v2367_v8, %v179_v24 }
  0x1b   :  { %v88_v10 = vand.u32 4294901760, %v81_v4  ;;  %v90_v11 = vand.u32 4294901760, %v80_v5  ;;  %v206_v12 = vsub.f32 %v84_v61, %v94_v1  ;;  %v166_v40 = vand.u32 4294901760, %v165_v27 }
  0x1c   :  { %v201_v14 = vand.u32 4294901760, %v200_v7  ;;  %v175_v45 = vand.u32 4294901760, %v174_v36  ;;  %v181_v47 = vand.u32 4294901760, %v180_v41 }
  0x1d   :  { %v2130_v16 = vpack.c.bf16 %v92_v59, %v88_v10  ;;  %v2132_v17 = vpack.c.bf16 %v94_v1, %v90_v11  ;;  %v194_v18 = vsub.f32 %v80_v5, %v90_v11  ;;  %v188_v19 = vsub.f32 %v81_v4, %v88_v10 }
  0x1e   :  { %v202_v20 = vsub.f32 %v200_v7, %v201_v14  ;;  %v207_v23 = vand.u32 4294901760, %v206_v12 }
  0x1f   :  { %2131 = vmatprep.subr.bf16.mxu0 %v2130_v16  ;;  %v189_v25 = vand.u32 4294901760, %v188_v19  ;;  %v195_v26 = vand.u32 4294901760, %v194_v18  ;;  %v2138_v28 = vpack.c.bf16 %v200_v7, %v188_v19  ;;  %v2140_v42 = vpack.c.bf16 %v206_v12, %v194_v18 }
  0x20   :  { %2133 = vmatpush1.bf16.xpose.msra.mxu0 %v2132_v17  ;;  %v208_v29 = vsub.f32 %v206_v12, %v207_v23  ;;  %v203_v34 = vand.u32 4294901760, %v202_v20 }
  0x21   :  { %v190_v30 = vsub.f32 %v188_v19, %v189_v25  ;;  %v196_v35 = vsub.f32 %v194_v18, %v195_v26  ;;  %2139 = vmatprep.subr.bf16.mxu0 %v2138_v28  ;;  %v2146_v46 = vpack.c.bf16 %v201_v14, %v189_v25  ;;  %v2148_v48 = vpack.c.bf16 %v207_v23, %v195_v26 }
  0x22   :  { %v209_v37 = vand.u32 4294901760, %v208_v29 }
  0x23   :  { %v191_v38 = vand.u32 4294901760, %v190_v30  ;;  %v197_v39 = vand.u32 4294901760, %v196_v35 }
  0x25   :  { %v2134_v43 = vpack.c.bf16 %v203_v34, %v191_v38  ;;  %v2136_v44 = vpack.c.bf16 %v209_v37, %v197_v39 }
  0x27   :  { %2135 = vmatprep.subr.bf16.mxu1 %v2134_v43  ;;  %167 = vmatmul.mubr.f32.vlgmr.msra.gmra.mrb[0].mxu0 %v166_v40 }
  0x28   :  { %2137 = vmatpush1.bf16.xpose.msra.mxu1 %v2136_v44  ;;  %2141 = vmatpush1.bf16.xpose.msra.mxu0 %v2140_v42 }
  0x29   :  { %176 = vmatprep.mubr.f32.mxu0 %v175_v45  ;;  %2143 = vmatprep.subr.bf16.mxu1 %v2130_v16 }
  0x2a   :  { %2147 = vmatprep.subr.bf16.mxu0 %v2146_v46 }
  0x2b   :  { %182 = vmatmul.mubr.f32.gmra.mrb[2].mxu0 %v181_v47 }
  0x2c   :  { %360 = vmatprep.mubr.f32.mxu0 %v2320_v6  ;;  %v2275_v6 = vmov 0.0  }
  0x2d   :  { %17 = vst.msk [vmem:[#allocation2] sm:$0xff] %vm16_vm7, %v2275_v6  ;;  %18 = vst.msk [vmem:[#allocation2 + $0x8] sm:$0xff] %vm16_vm7, %v2275_v6 }
  0x2f   :  { %274 = vmatmul.mubr.f32.vlgmr.msra.gmra.mrb[0].mxu1 %v2333_v21  ;;  %363 = vmatmul.mubr.f32.vlgmr.msra.gmra.mrb[4].mxu0 %v2341_v31  ;;  %v653_v31 = vshrl.u32 %v23_v0, 7 }
  0x30   :  { %2145 = vmatpush1.bf16.xpose.msra.mxu1 %v2132_v17  ;;  %279 = vmatprep.mubr.f32.mxu1 %v2335_v22 }
  0x31   :  { %2149 = vmatpush1.bf16.xpose.msra.mxu0 %v2148_v48  ;;  %369 = vmatprep.mubr.f32.mxu0 %v2344_v32  ;;  %v656_v50 = vadd.s32 1, %v653_v31  ;;  %v654_v57 = vmul.u32 4, %v653_v31 }
  0x32   :  { %2151 = vmatprep.subr.bf16.mxu1 %v2130_v16 }
  0x33   :  { %281 = vmatmul.mubr.f32.gmra.mrb[2].mxu1 %v2346_v33  ;;  %372 = vmatmul.mubr.f32.gmra.mrb[6].mxu0 %v2367_v8  ;;  %v657_v58 = vmul.u32 4, %v656_v50  ;;  %v662_v1 = vadd.s32 8, %v654_v57  ;;  %vm2404_vm9 = vcmp.ge.s32.totalorder %v2313_v2, %v654_v57 }
  0x34   :  { %448 = vmatprep.mubr.f32.mxu1 %v158_v9  ;;  %545 = vmatprep.mubr.f32.mxu0 %v2315_v3  ;;  %v2276_v9 = vmov 0.0|0.0   ;;  %v86_v19 = vld [vmem:[#allocation2] sm:$0xff]  ;;  %v87_v27 = vld [vmem:[#allocation2 + $0x8] sm:$0xff] }
  0x35   :  { %2154 = vmatprep.subr.bf16.mxu0 %v2276_v9  ;;  %v664_v4 = vadd.s32 8, %v657_v58  ;;  %vm2409_vm10 = vcmp.lt.s32.totalorder %v2313_v2, %v657_v58  ;;  %vm663_vm11 = vcmp.ge.s32.totalorder %v2313_v2, %v662_v1 }
  0x36   :  { %vm659_vm13 = vmand %vm2404_vm9, %vm2409_vm10 }
  0x37   :  { %452 = vmatmul.mubr.f32.vlgmr.msra.gmra.mrb[4].mxu1 %v164_v13  ;;  %vm665_vm12 = vcmp.lt.s32.totalorder %v2313_v2, %v664_v4  ;;  %v2420_v25 = vsel %vm659_vm13, 1.0, %v2275_v6 }
  0x38   :  { %2153 = vmatpush1.bf16.xpose.msra.mxu1 %v2132_v17  ;;  %547 = vmatmul.mubr.f32.vlgmr.msra.gmra.mrb[8].mxu0 %v2333_v21  ;;  %vm666_vm14 = vmand %vm663_vm11, %vm665_vm12  ;;  %v670_v34 = vsel %vm16_vm7, %v2420_v25, 0 }
  0x39   :  { %459 = vmatprep.mubr.f32.mxu1 %v173_v15  ;;  %552 = vmatprep.mubr.f32.mxu0 %v2335_v22  ;;  %v2423_v2 = vsel %vm666_vm14, 1.0, %v2275_v6  ;;  %v740_v37 = vsub.f32 %v670_v34, %v670_v34 }
  0x3a   :  { %2172 = vmatprep.subr.bf16.mxu1 %v2276_v9  ;;  %v1132_v35 = vsel %vm16_vm7, %v2423_v2, 0 }
  0x3b   :  { %463 = vmatmul.mubr.f32.gmra.mrb[6].mxu1 %v179_v24  ;;  %v1202_v38 = vsub.f32 %v1132_v35, %v1132_v35  ;;  %v741_v40 = vand.u32 4294901760, %v740_v37 }
  0x3c   :  { %554 = vmatmul.mubr.f32.gmra.mrb[10].mxu0 %v2346_v33  ;;  %628 = vmatprep.mubr.f32.mxu1 %v2315_v3 }
  0x3d   :  { %2050 = vmatprep.mubr.msk.f32.mxu0 %vm2277_vm8, %v2275_v6  ;;  %v1203_v41 = vand.u32 4294901760, %v1202_v38  ;;  %v742_v45 = vsub.f32 %v740_v37, %v741_v40 }
  0x3f   :  { %630 = vmatmul.mubr.f32.vlgmr.msra.gmra.mrb[8].mxu1 %v2333_v21  ;;  %v1204_v46 = vsub.f32 %v1202_v38, %v1203_v41 }
  0x40   :  { %635 = vmatprep.mubr.f32.mxu1 %v2335_v22 }
  0x41   :  { %v1205_v31 = vand.u32 4294901760, %v1204_v46 }
  0x43   :  { %637 = vmatmul.mubr.f32.gmra.mrb[10].mxu1 %v2346_v33 }
  0x44   :  { %2092 = vmatprep.mubr.msk.f32.mxu1 %vm2277_vm8, %v2275_v6 }
  0xfa   :  { %v168_v3 = vpop.f32.mrb[0].mxu0 }
  0xfb   :  { %v170_v21 = vpop.f32.mrb[1].mxu0 }
  0xfe   :  { %v183_v22 = vpop.f32.mrb[2].mxu0 }
  0xff   :  { %v185_v32 = vpop.f32.mrb[3].mxu0 }
 0x102   :  { %v275_v33 = vpop.f32.mrb[0].mxu1  ;;  %v364_v49 = vpop.f32.mrb[4].mxu0 }
 0x103   :  { %v276_v51 = vadd.f32 %v275_v33, %v168_v3  ;;  %v277_v52 = vpop.f32.mrb[1].mxu1  ;;  %v366_v53 = vpop.f32.mrb[5].mxu0 }
 0x105   :  { %v365_v54 = vadd.f32 %v364_v49, %v276_v51 }
 0x106   :  { %v282_v55 = vpop.f32.mrb[2].mxu1  ;;  %v373_v56 = vpop.f32.mrb[6].mxu0 }
 0x107   :  { %v283_v59 = vadd.f32 %v282_v55, %v183_v22  ;;  %v284_v60 = vpop.f32.mrb[3].mxu1  ;;  %v375_v61 = vpop.f32.mrb[7].mxu0  ;;  %v743_v22 = vand.u32 4294901760, %v742_v45 }
 0x109   :  { %v374_v62 = vadd.f32 %v373_v56, %v283_v59 }
 0x10a   :  { %v453_v63 = vpop.f32.mrb[4].mxu1 }
 0x10b   :  { %v454_v0 = vadd.f32 %v453_v63, %v365_v54  ;;  %v455_v5 = vpop.f32.mrb[5].mxu1  ;;  %v548_v7 = vpop.f32.mrb[8].mxu0 }
 0x10c   :  { %v550_v8 = vpop.f32.mrb[9].mxu0 }
 0x10d   :  { %v549_v10 = vadd.f32 %v548_v7, %v454_v0 }
 0x10e   :  { %v464_v13 = vpop.f32.mrb[6].mxu1 }
 0x10f   :  { %v465_v14 = vadd.f32 %v464_v13, %v374_v62  ;;  %v466_v15 = vpop.f32.mrb[7].mxu1  ;;  %v555_v16 = vpop.f32.mrb[10].mxu0 }
 0x110   :  { %v557_v17 = vpop.f32.mrb[11].mxu0 }
 0x111   :  { %v556_v18 = vadd.f32 %v555_v16, %v465_v14 }
 0x112   :  { %v631_v20 = vpop.f32.mrb[8].mxu1 }
 0x113   :  { %v632_v23 = vadd.f32 %v631_v20, %v549_v10  ;;  %v633_v24 = vpop.f32.mrb[9].mxu1 }
 0x115   :  { %v642_v26 = vadd.f32 %v632_v23, %v86_v19 }
 0x116   :  { %v638_v28 = vpop.f32.mrb[10].mxu1 }
 0x117   :  { %645 = vst.msk [vmem:[#allocation2] sm:$0xff] %vm16_vm7, %v642_v26  ;;  %v639_v29 = vadd.f32 %v638_v28, %v556_v18  ;;  %v640_v30 = vpop.f32.mrb[11].mxu1 }
 0x119   :  { %v643_v36 = vadd.f32 %v639_v29, %v87_v27 }
 0x11b   :  { %646 = vst.msk [vmem:[#allocation2 + $0x8] sm:$0xff] %vm16_vm7, %v643_v36 }
 0x11e   :  { %v650_v39 = vld [vmem:[#allocation2] sm:$0xff] }
 0x11f   :  { %v673_v42 = vand.u32 4294901760, %v650_v39 }
 0x121   :  { %v751_v43 = vsub.f32 %v650_v39, %v673_v42 }
 0x122   :  { %v651_v44 = vld [vmem:[#allocation2 + $0x8] sm:$0xff] }
 0x123   :  { %v676_v47 = vand.u32 4294901760, %v651_v44  ;;  %v752_v48 = vand.u32 4294901760, %v751_v43 }
 0x125   :  { %v2155_v3 = vpack.c.bf16 %v676_v47, %v673_v42  ;;  %v758_v21 = vsub.f32 %v651_v44, %v676_v47  ;;  %v753_v32 = vsub.f32 %v751_v43, %v752_v48 }
 0x127   :  { %2156 = vmatpush3.bf16.msra.mxu0 %v2155_v3  ;;  %2174 = vmatpush3.bf16.msra.mxu1 %v2155_v3  ;;  %v759_v33 = vand.u32 4294901760, %v758_v21  ;;  %v754_v50 = vand.u32 4294901760, %v753_v32  ;;  %v2161_v53 = vpack.c.bf16 %v758_v21, %v751_v43 }
 0x128   :  { %2157 = vmatprep.subr.bf16.mxu0 %v2276_v9  ;;  %2175 = vmatprep.subr.bf16.mxu1 %v2276_v9 }
 0x129   :  { %v760_v49 = vsub.f32 %v758_v21, %v759_v33  ;;  %v2167_v54 = vpack.c.bf16 %v759_v33, %v752_v48 }
 0x12a   :  { %2051 = vmatmul.mubr.f32.vlgmr.msra.gmra.mrb[12].mxu0 %v743_v22  ;;  %2093 = vmatmul.mubr.f32.vlgmr.msra.gmra.mrb[12].mxu1 %v1205_v31 }
 0x12b   :  { %v761_v51 = vand.u32 4294901760, %v760_v49  ;;  %2057 = vmatprep.mubr.msk.f32.mxu0 %vm2277_vm8, %v2275_v6  ;;  %2099 = vmatprep.mubr.msk.f32.mxu1 %vm2277_vm8, %v2275_v6 }
 0x12d   :  { %v2158_v52 = vpack.c.bf16 %v761_v51, %v754_v50 }
 0x12f   :  { %2159 = vmatpush3.bf16.msra.mxu0 %v2158_v52  ;;  %2177 = vmatpush3.bf16.msra.mxu1 %v2158_v52 }
 0x130   :  { %2160 = vmatprep.subr.bf16.mxu0 %v2276_v9  ;;  %2178 = vmatprep.subr.bf16.mxu1 %v2276_v9 }
 0x132   :  { %2058 = vmatmul.mubr.msk.f32.vlgmr.msra.gmra.mrb[12].mxu0 %vm16_vm7, %v2420_v25  ;;  %2100 = vmatmul.mubr.msk.f32.vlgmr.msra.gmra.mrb[12].mxu1 %vm16_vm7, %v2423_v2 }
 0x133   :  { %2162 = vmatpush3.bf16.msra.mxu0 %v2161_v53  ;;  %2180 = vmatpush3.bf16.msra.mxu1 %v2161_v53 }
 0x134   :  { %2064 = vmatprep.mubr.msk.f32.mxu0 %vm2277_vm8, %v2275_v6  ;;  %2163 = vmatprep.subr.bf16.mxu0 %v2276_v9 }
 0x135   :  { %2106 = vmatprep.mubr.msk.f32.mxu1 %vm2277_vm8, %v2275_v6  ;;  %2181 = vmatprep.subr.bf16.mxu1 %v2276_v9 }
 0x13a   :  { %2065 = vmatmul.mubr.f32.vlgmr.msra.gmra.mrb[12].mxu0 %v740_v37  ;;  %2107 = vmatmul.mubr.f32.vlgmr.msra.gmra.mrb[12].mxu1 %v1202_v38 }
 0x13b   :  { %2165 = vmatpush3.bf16.msra.mxu0 %v2155_v3  ;;  %2183 = vmatpush3.bf16.msra.mxu1 %v2155_v3 }
 0x13c   :  { %2071 = vmatprep.mubr.msk.f32.mxu0 %vm2277_vm8, %v2275_v6  ;;  %2166 = vmatprep.subr.bf16.mxu0 %v2276_v9 }
 0x13d   :  { %2113 = vmatprep.mubr.msk.f32.mxu1 %vm2277_vm8, %v2275_v6  ;;  %2184 = vmatprep.subr.bf16.mxu1 %v2276_v9 }
 0x142   :  { %2072 = vmatmul.mubr.f32.vlgmr.msra.gmra.mrb[12].mxu0 %v741_v40  ;;  %2114 = vmatmul.mubr.f32.vlgmr.msra.gmra.mrb[12].mxu1 %v1203_v41 }
 0x143   :  { %2168 = vmatpush3.bf16.msra.mxu0 %v2167_v54  ;;  %2186 = vmatpush3.bf16.msra.mxu1 %v2167_v54 }
 0x144   :  { %2078 = vmatprep.mubr.msk.f32.mxu0 %vm2277_vm8, %v2275_v6  ;;  %2169 = vmatprep.subr.bf16.mxu0 %v2276_v9 }
 0x145   :  { %2120 = vmatprep.mubr.msk.f32.mxu1 %vm2277_vm8, %v2275_v6  ;;  %2187 = vmatprep.subr.bf16.mxu1 %v2276_v9 }
 0x14a   :  { %2079 = vmatmul.mubr.msk.f32.vlgmr.msra.gmra.mrb[12].mxu0 %vm16_vm7, %v2420_v25  ;;  %2121 = vmatmul.mubr.msk.f32.vlgmr.msra.gmra.mrb[12].mxu1 %vm16_vm7, %v2423_v2 }
 0x14b   :  { %2171 = vmatpush3.bf16.msra.mxu0 %v2155_v3  ;;  %2189 = vmatpush3.bf16.msra.mxu1 %v2155_v3 }
 0x14c   :  { %2085 = vmatprep.mubr.msk.f32.mxu0 %vm2277_vm8, %v2275_v6  ;;  %2127 = vmatprep.mubr.msk.f32.mxu1 %vm2277_vm8, %v2275_v6 }
 0x152   :  { %2086 = vmatmul.mubr.msk.f32.vlgmr.msra.gmra.mrb[12].mxu0 %vm16_vm7, %v2420_v25  ;;  %2128 = vmatmul.mubr.msk.f32.vlgmr.msra.gmra.mrb[12].mxu1 %vm16_vm7, %v2423_v2 }
 0x225   :  { %v2473_v9 = vpop.f32.mrb[12].mxu0  ;;  %v2475_v55 = vpop.f32.mrb[12].mxu1 }
 0x226   :  { %1757 = vrot.lane.b32.xlu1 %v2475_v55, %s2278_s0  ;;  %v2129_v56 = vpop.f32.mrb[13].mxu1  ;;  %1645 = vrot.lane.b32.xlu0 %v2473_v9, %s2278_s0  ;;  %v2087_v57 = vpop.f32.mrb[13].mxu0  ;;  %v1593_v6 = vadd.f32 1e-08, %v2473_v9  ;;  %v1705_v58 = vadd.f32 1e-08, %v2475_v55 }
 0x228   :  { %2247 = vrcp.f32 %v1593_v6 }
 0x229   :  { %2249 = vrcp.f32 %v1705_v58 }
 0x22a   :  { %1628 = vrot.lane.b32.xlu1 %v2473_v9, %s2279_s1  ;;  %1612 = vrot.lane.b32.xlu0 %v2473_v9, %s2280_s17 }
 0x22e   :  { %1740 = vrot.lane.b32.xlu1 %v2475_v55, %s2279_s1 }
 0x232   :  { %v2248_v59 = vpop.eup %2247 }
 0x233   :  { %1601 = vrot.lane.b32.xlu1 %v2248_v59, %s2281_s18  ;;  %1597 = vrot.lane.b32.xlu0 %v2248_v59, %s2282_s19  ;;  %v2250_v60 = vpop.eup %2249 }
 0x237   :  { %1713 = vrot.lane.b32.xlu1 %v2250_v60, %s2281_s18  ;;  %1709 = vrot.lane.b32.xlu0 %v2250_v60, %s2282_s19 }
 0x23b   :  { %1785 = vrot.lane.b32.xlu1 %v2475_v55, %s2283_s20  ;;  %1724 = vrot.lane.b32.xlu0 %v2475_v55, %s2280_s17 }
 0x23f   :  { %1795 = vrot.lane.b32.xlu1 %v2475_v55, %s2282_s19  ;;  %1673 = vrot.lane.b32.xlu0 %v2473_v9, %s2283_s20 }
 0x243   :  { %1683 = vrot.lane.b32.xlu0 %v2473_v9, %s2282_s19 }
 0x298   :  { %v2499_v61 = vpop.permute.xlu1 %1757  ;;  %v2501_v62 = vpop.permute.xlu0 %1645 }
 0x29c   :  { %v1629_v63 = vpop.permute.xlu1 %1628  ;;  %v1613_v4 = vpop.permute.xlu0 %1612 }
 0x2a0   :  { %v2503_v1 = vpop.permute.xlu1 %1740 }
 0x2a5   :  { %v1602_v0 = vpop.permute.xlu1 %1601  ;;  %v1598_v5 = vpop.permute.xlu0 %1597 }
 0x2a6   :  { %v1600_v7 = vmul.f32 %v1598_v5, %v2473_v9  ;;  %v1604_v8 = vmul.f32 %v1602_v0, %v2473_v9 }
 0x2a8   :  { %v1615_v10 = vmul.f32 %v1613_v4, %v1600_v7  ;;  %v1605_v11 = vmul.f32 %v1600_v7, %v2473_v9  ;;  %v1621_v14 = vmul.f32 %v1604_v8, %v2473_v9  ;;  %v1654_v18 = vmul.f32 %v1613_v4, %v1604_v8 }
 0x2a9   :  { %v1710_v12 = vpop.permute.xlu0 %1709  ;;  %v1714_v13 = vpop.permute.xlu1 %1713  ;;  %v1627_v29 = vmul.f32 3.0, %v1600_v7  ;;  %v1666_v30 = vmul.f32 2.0, %v1604_v8  ;;  %v1637_v35 = vmul.f32 2.0, %v1600_v7  ;;  %v1692_v31 = vmul.f32 3.0, %v1604_v8 }
 0x2aa   :  { %1617 = vrot.lane.b32.xlu1 %v1615_v10, %s2284_s21  ;;  %1607 = vrot.lane.b32.xlu0 %v1605_v11, %s2281_s18  ;;  %v1712_v15 = vmul.f32 %v1710_v12, %v2475_v55  ;;  %v1716_v17 = vmul.f32 %v1714_v13, %v2475_v55 }
 0x2ab   :  { %v1631_v36 = vmul.f32 %v1629_v63, %v1627_v29  ;;  %v1667_v37 = vmul.f32 %v1666_v30, %v1629_v63  ;;  %v1638_v38 = vmul.f32 %v1637_v35, %v1600_v7  ;;  %v1648_v40 = vmul.f32 %v2501_v62, %v1637_v35 }
 0x2ac   :  { %v1817_v20 = vsub.f32 %v1600_v7, %v1712_v15  ;;  %v1835_v24 = vsub.f32 %v1604_v8, %v1716_v17  ;;  %v1717_v27 = vmul.f32 %v1712_v15, %v2475_v55  ;;  %v1733_v34 = vmul.f32 %v1716_v17, %v2475_v55 }
 0x2ad   :  { %v1725_v16 = vpop.permute.xlu0 %1724  ;;  %v1786_v26 = vpop.permute.xlu1 %1785  ;;  %v1749_v39 = vmul.f32 2.0, %v1712_v15  ;;  %v1639_v41 = vmul.f32 %v1638_v38, %v2473_v9  ;;  %v1739_v43 = vmul.f32 3.0, %v1712_v15  ;;  %v1660_v45 = vmul.f32 %v1638_v38, %v1613_v4 }
 0x2ae   :  { %1623 = vrot.lane.b32.xlu0 %v1621_v14, %s2284_s21  ;;  %v1766_v25 = vmul.f32 %v1725_v16, %v1716_v17  ;;  %v1727_v2 = vmul.f32 %v1725_v16, %v1712_v15  ;;  %v1788_v28 = vmul.f32 %v1786_v26, %v1712_v15  ;;  %v1778_v46 = vmul.f32 2.0, %v1716_v17 }
 0x2af   :  { %v1760_v42 = vmul.f32 %v2499_v61, %v1749_v39  ;;  %v1750_v44 = vmul.f32 %v1749_v39, %v1712_v15  ;;  %v1743_v47 = vmul.f32 %v2503_v1, %v1739_v43  ;;  %v1682_v21 = vmul.f32 %v1666_v30, %v1604_v8 }
 0x2b0   :  { %v1779_v22 = vmul.f32 %v1778_v46, %v2503_v1  ;;  %v1794_v49 = vmul.f32 %v1778_v46, %v1716_v17  ;;  %v1693_v50 = vmul.f32 %v1692_v31, %v2501_v62  ;;  %v1804_v51 = vmul.f32 3.0, %v1716_v17 }
 0x2b1   :  { %v1674_v19 = vpop.permute.xlu0 %1673  ;;  %v1772_v48 = vmul.f32 %v1750_v44, %v1725_v16  ;;  %v1796_v33 = vpop.permute.xlu1 %1795  ;;  %v1699_v54 = vmul.f32 %v1682_v21, %v2473_v9  ;;  %v1751_v56 = vmul.f32 %v1750_v44, %v2475_v55  ;;  %v1818_v57 = vmul.f32 %v1817_v20, %v1817_v20 }
 0x2b2   :  { %v1676_v23 = vmul.f32 %v1674_v19, %v1600_v7  ;;  %1656 = vrot.lane.b32.xlu0 %v1654_v18, %s2285_s22  ;;  %v1798_v52 = vmul.f32 %v1796_v33, %v1794_v49  ;;  %v1805_v53 = vmul.f32 %v1804_v51, %v2499_v61  ;;  %v1811_v6 = vmul.f32 %v1794_v49, %v2475_v55 }
 0x2b3   :  { %v1836_v58 = vmul.f32 %v1835_v24, %v1835_v24 }
 0x2b4   :  { %1678 = vrot.lane.b32.xlu1 %v1676_v23, %s2286_s23 }
 0x2b5   :  { %v1684_v3 = vpop.permute.xlu0 %1683 }
 0x2b6   :  { %1768 = vrot.lane.b32.xlu0 %v1766_v25, %s2285_s22  ;;  %v1686_v32 = vmul.f32 %v1684_v3, %v1682_v21 }
 0x2b8   :  { %1729 = vrot.lane.b32.xlu1 %v1727_v2, %s2284_s21 }
 0x2ba   :  { %1719 = vrot.lane.b32.xlu0 %v1717_v27, %s2281_s18 }
 0x2bc   :  { %1790 = vrot.lane.b32.xlu1 %v1788_v28, %s2286_s23 }
 0x2be   :  { %1735 = vrot.lane.b32.xlu0 %v1733_v34, %s2284_s21 }
 0x2c0   :  { %1633 = vrot.lane.b32.xlu1 %v1631_v36, %s2285_s22 }
 0x2c2   :  { %1669 = vrot.lane.b32.xlu0 %v1667_v37, %s2287_s24 }
 0x2c4   :  { %1650 = vrot.lane.b32.xlu1 %v1648_v40, %s2287_s24 }
 0x2c6   :  { %1641 = vrot.lane.b32.xlu0 %v1639_v41, %s2285_s22 }
 0x2c8   :  { %1762 = vrot.lane.b32.xlu1 %v1760_v42, %s2287_s24 }
 0x2ca   :  { %1662 = vrot.lane.b32.xlu0 %v1660_v45, %s2287_s24 }
 0x2cc   :  { %1745 = vrot.lane.b32.xlu1 %v1743_v47, %s2285_s22 }
 0x2ce   :  { %1774 = vrot.lane.b32.xlu0 %v1772_v48, %s2287_s24 }
 0x2d0   :  { %1781 = vrot.lane.b32.xlu1 %v1779_v22, %s2287_s24 }
 0x2d2   :  { %1688 = vrot.lane.b32.xlu0 %v1686_v32, %s2287_s24 }
 0x2d4   :  { %1695 = vrot.lane.b32.xlu1 %v1693_v50, %s2286_s23 }
 0x2d6   :  { %1800 = vrot.lane.b32.xlu0 %v1798_v52, %s2287_s24 }
 0x2d8   :  { %1807 = vrot.lane.b32.xlu1 %v1805_v53, %s2286_s23 }
 0x2da   :  { %1701 = vrot.lane.b32.xlu0 %v1699_v54, %s2286_s23 }
 0x2dc   :  { %1753 = vrot.lane.b32.xlu1 %v1751_v56, %s2285_s22 }
 0x2de   :  { %1820 = vrot.lane.b32.xlu0 %v1818_v57, %s2280_s17 }
 0x2e0   :  { %1813 = vrot.lane.b32.xlu1 %v1811_v6, %s2286_s23 }
 0x2e2   :  { %1838 = vrot.lane.b32.xlu0 %v1836_v58, %s2279_s1 }
 0x31c   :  { %v1608_v59 = vpop.permute.xlu0 %1607  ;;  %v1618_v61 = vpop.permute.xlu1 %1617 }
 0x31d   :  { %v1620_v0 = vsub.f32 %v2473_v9, %v1618_v61  ;;  %v1610_v8 = vsub.f32 %v2473_v9, %v1608_v59 }
 0x320   :  { %v1624_v60 = vpop.permute.xlu0 %1623 }
 0x321   :  { %v1626_v15 = vsub.f32 %v2473_v9, %v1624_v60 }
 0x324   :  { %v1657_v62 = vpop.permute.xlu0 %1656 }
 0x326   :  { %v1679_v63 = vpop.permute.xlu1 %1678 }
 0x328   :  { %v1769_v1 = vpop.permute.xlu0 %1768 }
 0x32a   :  { %v1730_v4 = vpop.permute.xlu1 %1729 }
 0x32b   :  { %v1732_v5 = vsub.f32 %v2475_v55, %v1730_v4 }
 0x32c   :  { %v1720_v7 = vpop.permute.xlu0 %1719 }
 0x32d   :  { %v1871_v10 = vsub.f32 %v1620_v0, %v1732_v5  ;;  %v1722_v11 = vsub.f32 %v2475_v55, %v1720_v7 }
 0x32e   :  { %v1791_v12 = vpop.permute.xlu1 %1790 }
 0x32f   :  { %v1854_v13 = vsub.f32 %v1610_v8, %v1722_v11  ;;  %v1872_v23 = vmul.f32 %v1871_v10, %v1871_v10 }
 0x330   :  { %v1736_v14 = vpop.permute.xlu0 %1735 }
 0x331   :  { %v1855_v16 = vmul.f32 %v1854_v13, %v1854_v13  ;;  %v1738_v17 = vsub.f32 %v2475_v55, %v1736_v14 }
 0x332   :  { %v1634_v18 = vpop.permute.xlu1 %1633 }
 0x333   :  { %v1889_v19 = vsub.f32 %v1626_v15, %v1738_v17  ;;  %1857 = vrot.lane.b32.xlu0 %v1855_v16, %s2278_s0  ;;  %v1636_v32 = vsub.f32 %v2473_v9, %v1634_v18 }
 0x334   :  { %v1670_v20 = vpop.permute.xlu0 %1669 }
 0x335   :  { %v1890_v2 = vmul.f32 %v1889_v19, %v1889_v19  ;;  %v1672_v40 = vsub.f32 %v2473_v9, %v1670_v20 }
 0x336   :  { %v1651_v24 = vpop.permute.xlu1 %1650 }
 0x337   :  { %1874 = vrot.lane.b32.xlu0 %v1872_v23, %s2283_s20  ;;  %v1653_v27 = vsub.f32 %v2473_v9, %v1651_v24  ;;  %v1681_v45 = vsub.f32 %v1672_v40, %v1679_v63 }
 0x338   :  { %v1642_v25 = vpop.permute.xlu0 %1641 }
 0x339   :  { %v1659_v34 = vsub.f32 %v1653_v27, %v1657_v62  ;;  %v1644_v50 = vadd.f32 %v1642_v25, %v1636_v32 }
 0x33a   :  { %v1763_v26 = vpop.permute.xlu1 %1762 }
 0x33b   :  { %v1765_v28 = vsub.f32 %v2475_v55, %v1763_v26  ;;  %1892 = vrot.lane.b32.xlu0 %v1890_v2, %s2288_s25 }
 0x33c   :  { %v1663_v29 = vpop.permute.xlu0 %1662 }
 0x33d   :  { %v1771_v35 = vsub.f32 %v1765_v28, %v1769_v1  ;;  %v1665_v37 = vadd.f32 %v1663_v29, %v1659_v34 }
 0x33e   :  { %v1746_v30 = vpop.permute.xlu1 %1745 }
 0x33f   :  { %v1748_v33 = vsub.f32 %v2475_v55, %v1746_v30 }
 0x340   :  { %v1775_v36 = vpop.permute.xlu0 %1774 }
 0x341   :  { %v1777_v38 = vadd.f32 %v1775_v36, %v1771_v35 }
 0x342   :  { %v1782_v39 = vpop.permute.xlu1 %1781 }
 0x343   :  { %v1925_v41 = vsub.f32 %v1665_v37, %v1777_v38  ;;  %v1784_v42 = vsub.f32 %v2475_v55, %v1782_v39 }
 0x344   :  { %v1689_v43 = vpop.permute.xlu0 %1688 }
 0x345   :  { %v1793_v46 = vsub.f32 %v1784_v42, %v1791_v12  ;;  %v1691_v48 = vadd.f32 %v1689_v43, %v1681_v45  ;;  %v1926_v62 = vmul.f32 %v1925_v41, %v1925_v41 }
 0x346   :  { %v1696_v44 = vpop.permute.xlu1 %1695 }
 0x347   :  { %v1698_v53 = vsub.f32 %v2473_v9, %v1696_v44 }
 0x348   :  { %v1801_v47 = vpop.permute.xlu0 %1800 }
 0x349   :  { %v1803_v3 = vadd.f32 %v1801_v47, %v1793_v46 }
 0x34a   :  { %v1808_v21 = vpop.permute.xlu1 %1807 }
 0x34b   :  { %v1943_v22 = vsub.f32 %v1691_v48, %v1803_v3  ;;  %v1810_v54 = vsub.f32 %v2475_v55, %v1808_v21 }
 0x34c   :  { %v1702_v31 = vpop.permute.xlu0 %1701 }
 0x34d   :  { %v1704_v58 = vadd.f32 %v1702_v31, %v1698_v53  ;;  %v1944_v63 = vmul.f32 %v1943_v22, %v1943_v22 }
 0x34e   :  { %v1754_v49 = vpop.permute.xlu1 %1753 }
 0x34f   :  { %v1756_v51 = vadd.f32 %v1754_v49, %v1748_v33 }
 0x350   :  { %v1821_v52 = vpop.permute.xlu0 %1820 }
 0x351   :  { %v1908_v56 = vsub.f32 %v1644_v50, %v1756_v51  ;;  %v1824_v57 = vsel %vm1823_vm15, %v1821_v52, 0.0 }
 0x352   :  { %v1814_v6 = vpop.permute.xlu1 %1813  ;;  %1825 = vadd.xlane.f32.xlu1 %v1824_v57 }
 0x353   :  { %v1909_v59 = vmul.f32 %v1908_v56, %v1908_v56  ;;  %v1816_v60 = vadd.f32 %v1814_v6, %v1810_v54 }
 0x354   :  { %v1839_v55 = vpop.permute.xlu0 %1838 }
 0x355   :  { %v1961_v61 = vsub.f32 %v1704_v58, %v1816_v60  ;;  %1911 = vrot.lane.b32.xlu0 %v1909_v59, %s2289_s26  ;;  %v1841_v1 = vsel %vm1823_vm15, %v1839_v55, 0.0 }
 0x357   :  { %v1962_v9 = vmul.f32 %v1961_v61, %v1961_v61 }
 0x359   :  { %1928 = vrot.lane.b32.xlu0 %v1926_v62, %s2290_s27 }
 0x35d   :  { %1946 = vrot.lane.b32.xlu0 %v1944_v63, %s2291_s28 }
 0x361   :  { %1964 = vrot.lane.b32.xlu0 %v1962_v9, %s2292_s29 }
 0x380   :  { %1842 = vadd.xlane.f32.xlu0 %v1841_v1 }
 0x3a5   :  { %v1858_v4 = vpop.permute.xlu0 %1857 }
 0x3a6   :  { %v1860_v0 = vsel %vm1823_vm15, %v1858_v4, 0.0 }
 0x3a7   :  { %1861 = vadd.xlane.f32.xlu1 %v1860_v0 }
 0x3a9   :  { %v1875_v5 = vpop.permute.xlu0 %1874 }
 0x3aa   :  { %v1877_v7 = vsel %vm1823_vm15, %v1875_v5, 0.0 }
 0x3ab   :  { %1878 = vadd.xlane.f32.xlu1 %v1877_v7 }
 0x3ad   :  { %v1893_v8 = vpop.permute.xlu0 %1892 }
 0x3ae   :  { %v1895_v10 = vsel %vm1823_vm15, %v1893_v8, 0.0 }
 0x3af   :  { %1896 = vadd.xlane.f32.xlu1 %v1895_v10 }
 0x3c7   :  { %v1912_v11 = vpop.permute.xlu0 %1911 }
 0x3c8   :  { %v1914_v12 = vsel %vm1823_vm15, %v1912_v11, 0.0 }
 0x3c9   :  { %1915 = vadd.xlane.f32.xlu1 %v1914_v12 }
 0x3cb   :  { %v1929_v13 = vpop.permute.xlu0 %1928 }
 0x3cc   :  { %v1931_v14 = vsel %vm1823_vm15, %v1929_v13, 0.0 }
 0x3cd   :  { %1932 = vadd.xlane.f32.xlu1 %v1931_v14 }
 0x3cf   :  { %v1947_v15 = vpop.permute.xlu0 %1946 }
 0x3d0   :  { %v1949_v16 = vsel %vm1823_vm15, %v1947_v15, 0.0 }
 0x3d1   :  { %1950 = vadd.xlane.f32.xlu1 %v1949_v16 }
 0x3d3   :  { %v1965_v17 = vpop.permute.xlu0 %1964 }
 0x3d4   :  { %v1967_v18 = vsel %vm1823_vm15, %v1965_v17, 0.0 }
 0x3d5   :  { %1968 = vadd.xlane.f32.xlu1 %v1967_v18 }
 0x3df   :  { %v1826_v19 = vpop.xlane.xlu1 %1825 }
 0x3e0   :  { %v1827_v20 = vrot.slane %v1826_v19, 4 }
 0x3e2   :  { %v1828_v23 = vadd.f32 %v1827_v20, %v1826_v19 }
 0x3e4   :  { %v1829_v24 = vrot.slane %v1828_v23, 2 }
 0x3e6   :  { %v1830_v25 = vadd.f32 %v1829_v24, %v1828_v23 }
 0x3e8   :  { %v1831_v2 = vrot.slane %v1830_v25, 1 }
 0x3ea   :  { %v1832_v26 = vadd.f32 %v1831_v2, %v1830_v25 }
 0x3ec   :  { %2210 = vpush %v1832_v26 }
 0x40d   :  { %v1843_v27 = vpop.xlane.xlu0 %1842 }
 0x40e   :  { %v1844_v28 = vrot.slane %v1843_v27, 4 }
 0x410   :  { %v1845_v29 = vadd.f32 %v1844_v28, %v1843_v27 }
 0x412   :  { %v1846_v30 = vrot.slane %v1845_v29, 2 }
 0x414   :  { %v1847_v34 = vadd.f32 %v1846_v30, %v1845_v29 }
 0x416   :  { %v1848_v35 = vrot.slane %v1847_v34, 1 }
 0x418   :  { %v1849_v36 = vadd.f32 %v1848_v35, %v1847_v34 }
 0x41a   :  { %2212 = vpush %v1849_v36 }
 0x41d   :  { %s2211_s30 = spop %2210 }
 0x41e   :  { %v1834_v26 = vstv %s2211_s30 }
 0x434   :  { %v1862_v37 = vpop.xlane.xlu1 %1861 }
 0x435   :  { %v1863_v38 = vrot.slane %v1862_v37, 4 }
 0x437   :  { %v1864_v39 = vadd.f32 %v1863_v38, %v1862_v37 }
 0x438   :  { %v1879_v40 = vpop.xlane.xlu1 %1878 }
 0x439   :  { %v1865_v41 = vrot.slane %v1864_v39, 2  ;;  %v1880_v42 = vrot.slane %v1879_v40, 4 }
 0x43b   :  { %v1881_v43 = vadd.f32 %v1880_v42, %v1879_v40  ;;  %v1866_v44 = vadd.f32 %v1865_v41, %v1864_v39 }
 0x43c   :  { %v1897_v45 = vpop.xlane.xlu1 %1896 }
 0x43d   :  { %v1882_v46 = vrot.slane %v1881_v43, 2  ;;  %v1898_v47 = vrot.slane %v1897_v45, 4  ;;  %v1867_v48 = vrot.slane %v1866_v44, 1 }
 0x43f   :  { %v1899_v3 = vadd.f32 %v1898_v47, %v1897_v45  ;;  %v1868_v21 = vadd.f32 %v1867_v48, %v1866_v44  ;;  %v1883_v22 = vadd.f32 %v1882_v46, %v1881_v43 }
 0x441   :  { %v1900_v31 = vrot.slane %v1899_v3, 2  ;;  %2214 = vpush %v1868_v21  ;;  %v1884_v32 = vrot.slane %v1883_v22, 1 }
 0x443   :  { %v1885_v33 = vadd.f32 %v1884_v32, %v1883_v22  ;;  %v1901_v49 = vadd.f32 %v1900_v31, %v1899_v3 }
 0x445   :  { %2216 = vpush %v1885_v33  ;;  %v1902_v50 = vrot.slane %v1901_v49, 1 }
 0x447   :  { %v1903_v51 = vadd.f32 %v1902_v50, %v1901_v49 }
 0x449   :  { %2218 = vpush %v1903_v51 }
 0x44b   :  { %s2213_s3 = spop %2212 }
 0x44c   :  { %v1851_v24 = vstv %s2213_s3 }
 0x44d   :  { %v1852_v29 = vadd.f32 %v1851_v24, %v1834_v26 }
 0x44f   :  { %v1853_v37 = vmul.f32 0.25, %v1852_v29 }
 0x456   :  { %v1916_v52 = vpop.xlane.xlu1 %1915 }
 0x457   :  { %v1917_v53 = vrot.slane %v1916_v52, 4 }
 0x459   :  { %v1918_v54 = vadd.f32 %v1917_v53, %v1916_v52 }
 0x45a   :  { %v1933_v56 = vpop.xlane.xlu1 %1932 }
 0x45b   :  { %v1919_v57 = vrot.slane %v1918_v54, 2  ;;  %v1934_v6 = vrot.slane %v1933_v56, 4 }
 0x45d   :  { %v1935_v58 = vadd.f32 %v1934_v6, %v1933_v56  ;;  %v1920_v59 = vadd.f32 %v1919_v57, %v1918_v54 }
 0x45e   :  { %v1951_v60 = vpop.xlane.xlu1 %1950 }
 0x45f   :  { %v1936_v61 = vrot.slane %v1935_v58, 2  ;;  %v1952_v62 = vrot.slane %v1951_v60, 4  ;;  %v1921_v63 = vrot.slane %v1920_v59, 1 }
 0x461   :  { %v1953_v9 = vadd.f32 %v1952_v62, %v1951_v60  ;;  %v1922_v55 = vadd.f32 %v1921_v63, %v1920_v59  ;;  %v1937_v1 = vadd.f32 %v1936_v61, %v1935_v58 }
 0x462   :  { %v1969_v4 = vpop.xlane.xlu1 %1968 }
 0x463   :  { %v1954_v0 = vrot.slane %v1953_v9, 2  ;;  %v1970_v5 = vrot.slane %v1969_v4, 4  ;;  %2220 = vpush %v1922_v55  ;;  %v1938_v7 = vrot.slane %v1937_v1, 1 }
 0x465   :  { %v1971_v8 = vadd.f32 %v1970_v5, %v1969_v4  ;;  %v1939_v10 = vadd.f32 %v1938_v7, %v1937_v1  ;;  %v1955_v11 = vadd.f32 %v1954_v0, %v1953_v9 }
 0x467   :  { %v1972_v12 = vrot.slane %v1971_v8, 2  ;;  %2222 = vpush %v1939_v10  ;;  %v1956_v13 = vrot.slane %v1955_v11, 1 }
 0x469   :  { %v1973_v14 = vadd.f32 %v1972_v12, %v1971_v8  ;;  %v1957_v15 = vadd.f32 %v1956_v13, %v1955_v11 }
 0x46b   :  { %2224 = vpush %v1957_v15  ;;  %v1974_v16 = vrot.slane %v1973_v14, 1 }
 0x46d   :  { %v1975_v17 = vadd.f32 %v1974_v16, %v1973_v14 }
 0x46f   :  { %2226 = vpush %v1975_v17 }
 0x472   :  { %s2215_s4 = spop %2214 }
 0x473   :  { %v1870_v19 = vstv %s2215_s4 }
 0x476   :  { %s2217_s5 = spop %2216 }
 0x477   :  { %v1887_v18 = vstv %s2217_s5 }
 0x478   :  { %v1888_v23 = vadd.f32 %v1887_v18, %v1870_v19 }
 0x47a   :  { %s2219_s6 = spop %2218 }
 0x47b   :  { %v1905_v20 = vstv %s2219_s6 }
 0x47c   :  { %v1906_v2 = vadd.f32 %v1905_v20, %v1888_v23 }
 0x47e   :  { %v1907_v34 = vmul.f32 0.16666667, %v1906_v2 }
 0x480   :  { %v1980_v39 = vadd.f32 %v1907_v34, %v1853_v37 }
 0x494   :  { %s2221_s7 = spop %2220 }
 0x495   :  { %v1924_v27 = vstv %s2221_s7 }
 0x498   :  { %s2223_s8 = spop %2222 }
 0x499   :  { %v1941_v25 = vstv %s2223_s8 }
 0x49a   :  { %v1942_v30 = vadd.f32 %v1941_v25, %v1924_v27 }
 0x49c   :  { %s2225_s9 = spop %2224 }
 0x49d   :  { %v1959_v28 = vstv %s2225_s9 }
 0x49e   :  { %v1960_v35 = vadd.f32 %v1959_v28, %v1942_v30 }
 0x4a0   :  { %s2227_s10 = spop %2226 }
 0x4a1   :  { %v1977_v36 = vstv %s2227_s10 }
 0x4a2   :  { %v1978_v38 = vadd.f32 %v1977_v36, %v1960_v35 }
 0x4a4   :  { %v1979_v40 = vmul.f32 0.125, %v1978_v38 }
 0x4a6   :  { %v1981_v41 = vadd.f32 %v1980_v39, %v1979_v40 }
 0x4a8   :  { %1983 = vst [vmem:[#allocation3] sm:$0x1] %v1981_v41 }
 0x4a9   :  { %2262 = shalt.err (!%p2259_p4)
}
 0x4aa   :  { %s2263_s0 = scalar_lea.hbm %s2590_s2, 16 }
 0x4ab   :  { %p2264_p5 = scmp.ne.s32.totalorder %s2590_s2, %s2263_s0  ;;  %p2267_p6 = scmp.lt.u32.totalorder %s2263_s0, %s2590_s2 }
 0x4ad   :  { %p2269_p7 = pnand %p2267_p6, %p2264_p5 }
 0x4af   :  { %2272 = shalt.err (!%p2269_p7)
}
 0x4b0   :  { %1993 = dma.vmem_to_hbm [thread:$0]  %s1991_s12, 16, %s2590_s2, [#allocation4]  }
 0x4b1   :  { %2273 = dma.done.wait [#allocation4], 16  }
 0x4b2   :  { %2274 = vsyncadd [#allocation4], 4294967280 }
 0x4b3   :  { %1997 = vsyncpa [#allocation4], 1 }

</bundles_post_ra>
